<compile_context>
chip_gen: v7x
topology: tpu7x:2x2x1
jax: 0.10.0
libtpu: 0.0.40
codegen_flags: <defaults>
</compile_context>

<pallas_src>
import functools

import jax
import jax.numpy as jnp
from jax.experimental import pallas as pl
from jax.experimental.pallas import tpu as pltpu

_HIGH = jax.lax.Precision.HIGHEST          # parameter-side build / reference only


def _round_up(x, m):
    return ((x + m - 1) // m) * m


# ----------------------------------------------------------------------------
# Parameter-side preprocessing (pure JAX; run once per weight update).
# ----------------------------------------------------------------------------
def _fasthpp_tree(weights):
    """HouseHolder.get_V + FastH merge tree.  Returns (Y, W) with Y = V^T so that
    fasthpp(Xt) = Xt + unpad(W^T @ Y @ pad(Xt)).  Depends only on the parameters."""
    dim = weights.shape[0]
    p_dim = 1 << (dim - 1).bit_length()
    pad = p_dim - dim
    log2dim = p_dim.bit_length() - 1

    # torch.nn.functional.normalize(dim=0): column-wise L2 normalization.
    norm = jnp.maximum(jnp.linalg.norm(weights, axis=0, keepdims=True), 1e-12)
    vn = weights / norm
    v = jnp.zeros((p_dim, p_dim), weights.dtype).at[:dim, :dim].set(vn)
    if pad:
        v = v.at[dim:, dim:].add(jnp.eye(pad, dtype=weights.dtype))

    y = v.T
    w = -2.0 * y
    k = 1
    for _ in range(log2dim):
        k_2 = k
        k *= 2
        wv = w.reshape(p_dim // k_2, k_2, p_dim)
        yv = y.reshape(p_dim // k_2, k_2, p_dim)
        # m1 = Y_even @ W_odd^T : (groups, k_2, k_2)
        m1 = jnp.einsum("aip,ajp->aij", yv[0::2], wv[1::2], precision=_HIGH)
        # delta = (W_even^T @ m1)^T : (groups, k_2, p_dim), added to odd blocks
        delta = jnp.einsum("aip,aij->ajp", wv[0::2], m1, precision=_HIGH)
        wv = wv.at[1::2].add(delta)
        w = wv.reshape(p_dim, p_dim)
    return y, w


def build_correction(weights, *, param_dtype=None):
    """C such that forward(X) == X + X @ C.  Call once per weight update."""
    dim = weights.shape[0]
    y, w = _fasthpp_tree(weights.astype(jnp.float32))
    c = jnp.dot(y.T, w, precision=_HIGH)[:dim, :dim]
    if param_dtype is not None:
        c = c.astype(param_dtype)           # identity/residual stays exact (added in f32)
    return c


def build_fused_matrix(weights, *, out_lanes=128, param_dtype=None):
    """M_eff (columns lane-padded to a multiple of 128) such that
    forward(X) == (X @ M_eff)[:, :dim].  Used by the N-tiled large-dim path."""
    dim = weights.shape[0]
    c = build_correction(weights)           # f32
    m = jnp.eye(dim, dtype=jnp.float32) + c
    out_p = _round_up(dim, out_lanes)
    m_pad = jnp.zeros((dim, out_p), jnp.float32).at[:, :dim].set(m)
    if param_dtype is not None:
        m_pad = m_pad.astype(param_dtype)
    return m_pad


# ----------------------------------------------------------------------------
# Kernels.
# ----------------------------------------------------------------------------
def _residual_kernel(x_ref, c_ref, o_ref):
    """One batch tile: o = x + x @ C (f32 accumulation, residual add in f32)."""
    x = x_ref[...]
    xc = x.astype(c_ref.dtype) if x.dtype != c_ref.dtype else x
    acc = jnp.dot(xc, c_ref[...], preferred_element_type=jnp.float32)
    o_ref[...] = (x.astype(jnp.float32) + acc).astype(o_ref.dtype)


def _fused_kernel(x_ref, m_ref, o_ref):
    """One (batch, n) tile of the fused form: o = x @ M_eff[:, nblock]."""
    x = x_ref[...]
    m = m_ref[...]
    if x.dtype != m.dtype:
        x = x.astype(m.dtype)
    o_ref[...] = jnp.dot(x, m, preferred_element_type=jnp.float32).astype(o_ref.dtype)


# ----------------------------------------------------------------------------
# Tiling heuristics.
# ----------------------------------------------------------------------------
def _pick_bm(batch, dim, itemsize, *, target_bytes=2 << 20, max_bm=4096):
    """Batch-tile rows: ~2 MiB X tiles, multiple of 8, >=2 grid steps when batch
    allows (v7x has 2 TensorCores), preferring an exact divisor of batch so no
    jnp.pad copy of X is needed."""
    if batch <= 8:
        return batch                               # single full-array block
    bm = target_bytes // max(1, dim * itemsize)
    bm = max(8, min(max_bm, (bm // 8) * 8))
    half = _round_up(-(-batch // 2), 8)            # round_up(cdiv(batch, 2), 8)
    bm = min(bm, half, _round_up(batch, 8))
    if batch % 8 == 0:
        for cand in range(bm, 7, -8):
            if batch % cand == 0:
                return cand
    return bm


# ----------------------------------------------------------------------------
# Forward wrappers.
# ----------------------------------------------------------------------------
def fast_hpp_apply(x, c, *, bm=None):
    """out = x + x @ C with C precomputed (resident-C path).  Jit-friendly."""
    batch, dim = x.shape
    assert c.shape == (dim, dim)
    x_bytes = x.dtype.itemsize
    c_bytes = c.dtype.itemsize
    if bm is None:
        bm = _pick_bm(batch, dim, x_bytes)
    grid_b = pl.cdiv(batch, bm)
    batch_p = grid_b * bm
    # Padding is the rare fallback; _pick_bm normally chooses bm | batch.
    x_in = x if batch_p == batch else jnp.pad(x, ((0, batch_p - batch), (0, 0)))

    # The correction matrix has a constant index_map -> nothing to pipeline.
    # Single-buffer it once it is VMEM-significant (halves its residency).
    c_total = dim * dim * c_bytes
    if c_total >= (512 << 10):
        c_spec = pl.BlockSpec((dim, dim), lambda i: (0, 0),
                              pipeline_mode=pl.Buffered(1))
        c_bufs = 1
    else:
        c_spec = pl.BlockSpec((dim, dim), lambda i: (0, 0))
        c_bufs = 2

    working = c_bufs * c_total + 4 * bm * dim * x_bytes   # C + 2x X tile + 2x out tile
    vmem_limit = int(min(64 << 20, max(16 << 20, working + (4 << 20))))

    out = pl.pallas_call(
        _residual_kernel,
        out_shape=jax.ShapeDtypeStruct((batch_p, dim), x.dtype),
        grid_spec=pltpu.PrefetchScalarGridSpec(
            num_scalar_prefetch=0,
            grid=(grid_b,),
            in_specs=[
                pl.BlockSpec((bm, dim), lambda i: (i, 0)),   # X tile
                c_spec,                                      # resident C
            ],
            out_specs=pl.BlockSpec((bm, dim), lambda i: (i, 0)),
        ),
        compiler_params=pltpu.CompilerParams(
            dimension_semantics=("parallel",),
            vmem_limit_bytes=vmem_limit),
        cost_estimate=pl.CostEstimate(
            flops=2 * batch_p * dim * dim + batch_p * dim,
            bytes_accessed=2 * batch_p * dim * x_bytes + c_total,
            transcendentals=0),
    )(x_in, c)
    return out if batch_p == batch else out[:batch]


def fast_hpp_apply_tiled(x, m_pad, *, bm=None, tn=512):
    """Large-dim path: out = (x @ M_eff)[:, :dim] with M_eff tiled over its
    (lane-padded) output columns so nothing large stays resident in VMEM."""
    batch, dim = x.shape
    out_p = m_pad.shape[1]
    assert m_pad.shape[0] == dim and out_p % 128 == 0
    tn = max(128, min((tn // 128) * 128, out_p))
    while out_p % tn:
        tn -= 128
    x_bytes = x.dtype.itemsize
    m_bytes = m_pad.dtype.itemsize
    if bm is None:
        bm = _pick_bm(batch, dim, x_bytes)
    grid_b = pl.cdiv(batch, bm)
    batch_p = grid_b * bm
    x_in = x if batch_p == batch else jnp.pad(x, ((0, batch_p - batch), (0, 0)))
    grid_n = out_p // tn

    working = (2 * bm * dim * x_bytes + 2 * dim * tn * m_bytes + 2 * bm * tn * x_bytes)
    vmem_limit = int(min(64 << 20, max(16 << 20, working + (4 << 20))))
    # Note: for dims where even a (dim, tn) column block of M is too big, a K
    # ("arbitrary", last) grid axis with an f32 VMEM accumulator could be added.

    out = pl.pallas_call(
        _fused_kernel,
        out_shape=jax.ShapeDtypeStruct((batch_p, out_p), x.dtype),
        grid_spec=pltpu.PrefetchScalarGridSpec(
            num_scalar_prefetch=0,
            grid=(grid_b, grid_n),
            in_specs=[
                pl.BlockSpec((bm, dim), lambda i, j: (i, 0)),   # X tile (reused over j)
                pl.BlockSpec((dim, tn), lambda i, j: (0, j)),   # M column block
            ],
            out_specs=pl.BlockSpec((bm, tn), lambda i, j: (i, j)),  # lane-dense store
        ),
        compiler_params=pltpu.CompilerParams(
            dimension_semantics=("parallel", "parallel"),
            vmem_limit_bytes=vmem_limit),
        cost_estimate=pl.CostEstimate(
            flops=2 * batch_p * dim * out_p,
            bytes_accessed=(batch_p * dim * x_bytes
                            + grid_b * dim * out_p * m_bytes
                            + batch_p * out_p * x_bytes),
            transcendentals=0),
    )(x_in, m_pad)
    return out[:batch, :dim]


# How much C (f32/bf16) we are willing to keep resident in VMEM before switching
# to the column-tiled path (v7x: 64 MiB physical VMEM, 32 MiB scoped default).
_RESIDENT_C_LIMIT_BYTES = 24 << 20


def fast_hpp_forward(x, weights, *, param_dtype=None):
    """Convenience equivalent of Model.forward(X).  For repeated application,
    call build_correction()/build_fused_matrix() ONCE per weight update and use
    fast_hpp_apply()/fast_hpp_apply_tiled() directly (the build is O(dim^3 log dim))."""
    dim = weights.shape[0]
    c_bytes = jnp.dtype(param_dtype or jnp.float32).itemsize
    if dim * dim * c_bytes <= _RESIDENT_C_LIMIT_BYTES:
        return fast_hpp_apply(x, build_correction(weights, param_dtype=param_dtype))
    return fast_hpp_apply_tiled(x, build_fused_matrix(weights, param_dtype=param_dtype))


def reference_forward(x, weights):
    """Pure-JAX un-fused reference (mirrors the PyTorch module algebra)."""
    dim = weights.shape[0]
    y, w = _fasthpp_tree(weights.astype(jnp.float32))
    p_dim = y.shape[0]
    xp = jnp.pad(x, ((0, 0), (0, p_dim - dim)))
    t = jnp.dot(xp, y.T, precision=_HIGH)
    t = jnp.dot(t, w, precision=_HIGH)
    return x + t[:, :dim]


def _rel_err(a, b):
    return float(jnp.linalg.norm(a - b) / jnp.linalg.norm(b))


if __name__ == "__main__":
    key = jax.random.PRNGKey(0)
    k1, k2, k3, k4 = jax.random.split(key, 4)

    # --- test 1: dim=24 (pad 8, p_dim 32), batch=16, f32 resident-C path -----
    dim, batch = 24, 16
    x = jax.random.normal(k1, (batch, dim), dtype=jnp.float32)
    weights = jax.random.normal(k2, (dim, dim), dtype=jnp.float32)
    ref = reference_forward(x, weights)

    c = jax.block_until_ready(build_correction(weights))     # once per weight update
    apply_fn = jax.jit(fast_hpp_apply)                        # jitted forward: GEMM only
    out = jax.block_until_ready(apply_fn(x, c))
    assert out.shape == (batch, dim)
    assert _rel_err(out, ref) < 1e-2, "f32 resident-C kernel mismatch"

    # Module-forward convenience wrapper (same semantics as Model.forward).
    out_conv = jax.block_until_ready(fast_hpp_forward(x, weights))
    assert _rel_err(out_conv, ref) < 1e-2, "convenience wrapper mismatch"

    # --- test 2: dim=200 (pad 56, p_dim 256), batch=64, bf16-C residual path --
    dim2, batch2 = 200, 64
    x2 = jax.random.normal(k3, (batch2, dim2), dtype=jnp.float32)
    weights2 = jax.random.normal(k4, (dim2, dim2), dtype=jnp.float32)
    ref2 = reference_forward(x2, weights2)

    c2 = jax.block_until_ready(build_correction(weights2, param_dtype=jnp.bfloat16))
    out2 = jax.block_until_ready(apply_fn(x2, c2))
    assert out2.shape == (batch2, dim2)
    assert _rel_err(out2, ref2) < 2e-2, "bf16-C residual kernel mismatch"

    # --- test 3: same shapes through the N-tiled fused-M path (forced tn=128) -
    m2 = jax.block_until_ready(build_fused_matrix(weights2))  # (200, 256), f32
    out3 = jax.block_until_ready(fast_hpp_apply_tiled(x2, m2, tn=128))
    assert out3.shape == (batch2, dim2)
    assert _rel_err(out3, ref2) < 1e-2, "tiled fused-M kernel mismatch"

    print("KERNEL_OK")
</pallas_src>

<mosaic_0001>
module attributes {stable_mosaic.version = 11 : i64} {
  func.func @_residual_kernel(%arg0: i32, %arg1: memref<8x24xf32, #tpu.memory_space<vmem>>, %arg2: memref<24x24xf32, #tpu.memory_space<vmem>>, %arg3: memref<8x24xf32, #tpu.memory_space<vmem>>) attributes {dimension_semantics = [#tpu.dimension_semantics<parallel>], iteration_bounds = array<i64: 2>, scalar_prefetch = 0 : i64, scratch_operands = 0 : i64, tpu.core_type = #tpu.core_type<tc>, window_params = [{transform_indices = @transform_0, window_bounds = array<i64: 8, 24>}, {pipeline_mode = #tpu.pipeline_mode<synchronous>, transform_indices = @transform_1, window_bounds = array<i64: 24, 24>}, {transform_indices = @transform_2, window_bounds = array<i64: 8, 24>}]} {
    %c0 = arith.constant 0 : index
    %c0_0 = arith.constant 0 : index
    %0 = vector.load %arg1[%c0, %c0_0] : memref<8x24xf32, #tpu.memory_space<vmem>>, vector<8x24xf32>
    %c0_1 = arith.constant 0 : index
    %c0_2 = arith.constant 0 : index
    %1 = vector.load %arg2[%c0_1, %c0_2] : memref<24x24xf32, #tpu.memory_space<vmem>>, vector<24x24xf32>
    %cst = arith.constant dense<0.000000e+00> : vector<8x24xf32>
    %2 = tpu.matmul %0, %1, %cst {dimension_numbers = #tpu.dot_dimension_numbers<[1], [0], [0], [1], [0, 0, 1, 1], [], []>} : vector<8x24xf32>, vector<24x24xf32>, vector<8x24xf32> -> vector<8x24xf32>
    %3 = arith.addf %0, %2 : vector<8x24xf32>
    %c0_3 = arith.constant 0 : index
    %c0_4 = arith.constant 0 : index
    %4 = vector.load %arg3[%c0_3, %c0_4] : memref<8x24xf32, #tpu.memory_space<vmem>>, vector<8x24xf32>
    tpu.vector_store %arg3[%c0_3, %c0_4], %3 {strides = array<i32>} : memref<8x24xf32, #tpu.memory_space<vmem>>, vector<8x24xf32>,
    return
  }
  func.func @transform_0(%arg0: i32) -> (i32, i32) {
    %c0_i32 = arith.constant 0 : i32
    %c0_i32_0 = arith.constant 0 : i32
    return %arg0, %c0_i32 : i32, i32
  }
  func.func @transform_1(%arg0: i32) -> (i32, i32) {
    %c0_i32 = arith.constant 0 : i32
    %c0_i32_0 = arith.constant 0 : i32
    %c0_i32_1 = arith.constant 0 : i32
    return %c0_i32, %c0_i32_0 : i32, i32
  }
  func.func @transform_2(%arg0: i32) -> (i32, i32) {
    %c0_i32 = arith.constant 0 : i32
    %c0_i32_0 = arith.constant 0 : i32
    return %arg0, %c0_i32 : i32, i32
  }
}

</mosaic_0001>

<bundles_post_ra>
// kernel: fast_hpp_apply.1
= control target key start
LH: loop header
LB: loop body
LE: loop exit
PB: predicated region body
PF: predicated region fallthrough
CT: control target
= control target key end

     0   :  { %7 = vsyncpa [#allocation3], 0  ;;  %s790_s0 = inlined_call_operand.hbm [shape: f32[16,24], index: 0, kind: input, shape index: {}]   ;;  %s791_s1 = inlined_call_operand.hbm [shape: f32[24,24], index: 1, kind: input, shape index: {}]   ;;  %s792_s2 = inlined_call_operand.hbm [shape: f32[16,24], index: 2, kind: output, shape index: {}]  }
   0x1   :  { %9 = vsyncpa [#allocation3 + $0x1], 0 }
   0x2   :  { %10 = vsyncpa [#allocation6], 0 }
   0x3   :  { %11 = vsyncpa [#allocation4], 0 }
   0x4   :  { %13 = vsyncpa [#allocation4 + $0x1], 0  ;;  %s594_s9 = smov 0   ;;  %s596_s10 = smov 0  }
   0x5   :  { %s598_s11 = smov 0   ;;  %s600_s12 = smov 0  }
   0x6 LB: > { %s615_s13 = sadd.s32 4294967295, %s569_s12   ;;  %s348_s14 = sadd.s32 4294967294, %s569_s12   ;;  %s569_s12 = sphi %s600_s12, %s812_s12   ;;  %s565_s11 = sphi %s598_s11, %s811_s11   ;;  %s561_s10 = sphi %s596_s10, %s810_s10   ;;  %s557_s9 = sphi %s594_s9, %s809_s9  }
   0x7   : > { %p39_p0 = scmp.ne.s32.totalorder %s561_s10, %s557_s9  ;;  %p793_p1 = scmp.eq.s32.totalorder %s615_s13, 0 }
   0x8   : > { %p90_p3 = scmp.eq.s32.totalorder %s348_s14, 1  ;;  %p349_p5 = scmp.ge.s32.totalorder %s569_s12, 1 }
   0x9   : > { %p624_p4 = por %p793_p1, %p39_p0  ;;  %p97_p7 = scmp.lt.s32.totalorder %s569_s12, 3 }
   0xa   : > { %p629_p6 = por %p90_p3, %p39_p0  ;;  %s571_s18 = smov [#allocation5]  }
   0xb   : > { %s796_s15 = scalar_select %p624_p4, 1, 0 }
   0xc   : > { %s797_s16 = scalar_select %p629_p6, 1, 0 }
   0xd   : > { %p634_p8 = pnand %p349_p5, %p97_p7  ;;  %s109_s19 = sshll.u32 %s571_s18, 4  ;;  %s638_s19 = int_to_ptr.vmem [resolvable:$true] %s109_s19 }
   0xe   : > { %s650_s21 = sadd.s32 1, %s569_s12   ;;  %s26_s22 = sadd.s32 1, %s565_s11 }
   0xf   : > { %s798_s17 = scalar_select %p634_p8, 1, 0 }
  0x10   : > { %p387_p9 = pneg %p634_p8  ;;  %s23_s23 = ssub.s32 %s569_s12, %s650_s21 }
  0x11   : > { %s441_s26 = scalar_lea.hbm %s791_s1, 384 }
  0x12   : > { %p645_p11 = pnand %p387_p9, %p793_p1  ;;  %p442_p12 = scmp.ne.s32.totalorder %s791_s1, %s441_s26 }
  0x13   : > { %p448_p5 = scmp.lt.u32.totalorder %s441_s26, %s791_s1 }
  0x14   : > { %p443_p13 = pneg %p645_p11 }
  0x16   : > { %p444_p0 = pnand %p443_p13, %p442_p12 }
  0x18   : > { %p445_p3 = pneg %p444_p0 }
  0x1a   : > { %p450_p7 = pnand %p448_p5, %p445_p3 }
  0x1c   : > { %453 = shalt.err (!%p450_p7)
}
  0x1d   : > { %s454_s3 = scalar_lea.vmem %s638_s19, 384  ;;  %p462_p2 = scmp.lt.s32.totalorder %s638_s19, %s638_s19 }
  0x1e   : > { %p455_p9 = scmp.ne.s32.totalorder %s638_s19, %s454_s3  ;;  %p463_p6 = scmp.lt.s32.totalorder %s454_s3, %s454_s3 }
  0x20   : > { %p457_p10 = pnand %p455_p9, %p443_p13  ;;  %p464_p4 = por %p463_p6, %p462_p2 }
  0x22   : > { %p458_p1 = pneg %p457_p10 }
  0x24   : > { %p465_p8 = pnand %p464_p4, %p458_p1 }
  0x26   : > { %468 = shalt.err (!%p465_p8)
}
  0x27   : > { %s572_s4 = smov 128   ;;  %s573_s5 = smov 8  }
  0x28   : > { %390 = dma.hbm_to_vmem [thread:$0]  (!%p645_p11), %s791_s1, 384, %s638_s19, [#allocation6], %s572_s4, %s572_s4, %s573_s5  }
  0x29   : > { %p24_p2 = scmp.eq.s32.totalorder %s23_s23, 0  ;;  %p33_p1 = scmp.ne.s32.totalorder %s565_s11, %s561_s10 }
  0x2a   : > { %p34_p4 = scmp.eq.s32.totalorder %s569_s12, 0  ;;  %p400_p6 = scmp.lt.s32.totalorder %s569_s12, 2 }
  0x2b   : > { %s681_s8 = scalar_select %p24_p2, %s565_s11, %s26_s22  }
  0x2c   : > { %p35_p8 = por %p34_p4, %p33_p1  ;;  %p800_p10 = scmp.eq.s32.totalorder %s615_s13, 1 }
  0x2d   : > { %s123_s18 = sand.u32 1, %s565_s11   ;;  %s353_s24 = sshll.u32 %s569_s12, 7 }
  0x2e   : > { %p685_p12 = por %p800_p10, %p33_p1  ;;  %s352_s25 = sshll.u32 %s123_s18, 3 }
  0x2f   : > { %s694_s27 = scalar_lea.hbm %s790_s0, %s353_s24  ;;  %s127_s19 = scalar_lea.vmem [#allocation2], %s352_s25 }
  0x30   : > { %s134_s22 = sshll.u32 %s127_s19, 4  ;;  %p696_p11 = pnand %p400_p6, %p35_p8  ;;  %s700_s22 = int_to_ptr.vmem [resolvable:$true] %s134_s22 }
  0x31   : > { %s124_s28 = scalar_lea.sflag [#allocation3], %s123_s18  ;;  %s469_s29 = scalar_lea.hbm %s694_s27, 128 }
  0x32   : > { %p470_p13 = scmp.ne.s32.totalorder %s694_s27, %s469_s29  ;;  %p471_p0 = pneg %p696_p11 }
  0x33   : > { %s474_s4 = scalar_lea.hbm %s790_s0, 256  ;;  %p475_p7 = scmp.lt.u32.totalorder %s694_s27, %s790_s0 }
  0x34   : > { %p472_p3 = pnand %p471_p0, %p470_p13  ;;  %p476_p9 = scmp.lt.u32.totalorder %s474_s4, %s469_s29 }
  0x35   : > { %p478_p1 = scmp.lt.u32.totalorder %s469_s29, %s694_s27 }
  0x36   : > { %p473_p5 = pneg %p472_p3  ;;  %p477_p2 = por %p476_p9, %p475_p7 }
  0x38   : > { %p479_p4 = por %p478_p1, %p477_p2 }
  0x3a   : > { %p480_p6 = pnand %p479_p4, %p473_p5 }
  0x3c   : > { %483 = shalt.err (!%p480_p6)
}
  0x3d   : > { %s484_s7 = scalar_lea.vmem %s700_s22, 128  ;;  %s574_s18 = smov [#allocation2]  }
  0x3e   : > { %p485_p8 = scmp.ne.s32.totalorder %s700_s22, %s484_s7  ;;  %s489_s24 = sshll.u32 %s574_s18, 4  ;;  %s490_s24 = int_to_ptr.vmem [resolvable:$false] %s489_s24 }
  0x3f   : > { %s491_s25 = scalar_lea.vmem %s490_s24, 256  ;;  %p492_p3 = scmp.lt.s32.totalorder %s700_s22, %s490_s24 }
  0x40   : > { %p487_p10 = pnand %p485_p8, %p471_p0  ;;  %p493_p7 = scmp.lt.s32.totalorder %s491_s25, %s484_s7 }
  0x42   : > { %p488_p13 = pneg %p487_p10  ;;  %p494_p9 = por %p493_p7, %p492_p3 }
  0x44   : > { %p495_p2 = pnand %p494_p9, %p488_p13 }
  0x46   : > { %498 = shalt.err (!%p495_p2)
}
  0x47   : > { %394 = dma.hbm_to_vmem [thread:$0]  (!%p696_p11), %s694_s27, 128, %s700_s22, %s124_s28  }
  0x48   : > { %p803_p5 = scmp.ne.s32.totalorder %s798_s17, 0 }
  0x49   : > { %s730_s20 = sand.u32 (!%p803_p5), 1, %s561_s10   ;;  %p804_p0 = scmp.ne.s32.totalorder (!%p803_p5), %s796_s15, 0 }
  0x4a   : > { %143 = sbr.rel (%p803_p5) target bundleno = 321 (0x141), region = 28  ;;  %s355_s26 = sshll.u32 (!%p803_p5), %s730_s20, 3 }
  0x4b   : > { %s146_s19 = scalar_lea.sflag (!%p803_p5), [#allocation3], %s730_s20  ;;  %s149_s29 = scalar_lea.vmem (!%p803_p5), [#allocation2], %s355_s26 }
  0x51   : > { %544 = dma.done.wait (%p804_p0), %s146_s19, 128  }
  0x52   : > { %546 = vsyncadd (%p804_p0), %s146_s19, 4294967168  ;;  %p805_p1 = scmp.eq.s32.totalorder %s615_s13, 0 }
  0x54   : > { %548 = dma.done.wait (%p805_p1), [#allocation6], 384   ;;  %p806_p11 = pmov %p805_p1 }
  0x55   : > { %v575_v0 = vmov 0.0|0.0   ;;  %vm576_vm0 = vmmov 0   ;;  %v577_v1 = vmov 0.0   ;;  %v175_v2 = vld [vmem:[#allocation5] sm:$0xff]  ;;  %v176_v3 = vld [vmem:[#allocation5 + $0x8] sm:$0xff]  ;;  %v177_v5 = vld [vmem:[#allocation5 + $0x10] sm:$0xff] }
  0x56   : > { %550 = vsyncadd (%p806_p11), [#allocation6], 4294966912  ;;  %376 = vmatprep.subr.bf16.mxu0 %v575_v0  ;;  %373 = vmatprep.mubr.msk.f32.mxu0 %vm576_vm0, %v577_v1  ;;  %v377_v4 = vpack.c.bf16 %v176_v3, %v175_v2  ;;  %v174_v6 = vld [vmem:[%s149_s29] sm:$0xff]  ;;  %vm178_vm1 = vcmask 195584   ;;  %s360_s15 = sshll.u32 %s615_s13, 7  ;;  %s173_s17 = scalar_lea.vmem [#allocation7], %s355_s26 }
  0x57   : > { %s268_s27 = sshll.u32 %s173_s17, 4  ;;  %s746_s28 = scalar_lea.hbm %s792_s2, %s360_s15  ;;  %s748_s27 = int_to_ptr.vmem [resolvable:$true] %s268_s27 }
  0x58   : > { %378 = vmatpush3.bf16.msra.mxu0 %v377_v4  ;;  %s255_s30 = scalar_lea.sflag [#allocation4], %s730_s20  ;;  %s499_s3 = scalar_lea.vmem %s748_s27, 128 }
  0x59   : > { %371 = vmatprep.subr.mxu0 %v577_v1  ;;  %p500_p4 = scmp.ne.s32.totalorder %s748_s27, %s499_s3  ;;  %s578_s13 = smov [#allocation7]  }
  0x5a   : > { %s503_s4 = sshll.u32 %s578_s13, 4  ;;  %s504_s4 = int_to_ptr.vmem [resolvable:$false] %s503_s4 }
  0x5b   : > { %p501_p6 = pnand %p500_p4, %p685_p12  ;;  %s505_s5 = scalar_lea.vmem %s504_s4, 256 }
  0x5c   : > { %372 = vmatpush3.msra.mxu0 %v177_v5  ;;  %p506_p10 = scmp.lt.s32.totalorder %s748_s27, %s504_s4  ;;  %p507_p13 = scmp.lt.s32.totalorder %s505_s5, %s499_s3 }
  0x5d   : > { %374 = vmatmul.mubr.msk.f32.vlgmr.msra.gmra.mrb[0].mxu0 %vm178_vm1, %v174_v6  ;;  %p502_p8 = pneg %p501_p6 }
  0x5e   : > { %p508_p3 = por %p507_p13, %p506_p10 }
  0x60   : > { %p509_p7 = pnand %p508_p3, %p502_p8 }
 0x130   : > { %v248_v7 = vpop.f32.mrb[0].mxu0 }
 0x131   : > { %v252_v8 = vadd.f32 %v248_v7, %v174_v6  ;;  %v375_v9 = vpop.f32.mrb[1].mxu0 }
 0x133   : > { %253 = vst.msk [vmem:[%s173_s17] sm:$0xff] %vm178_vm1, %v252_v8 }
 0x134   : > { %512 = shalt.err (!%p509_p7)
}
 0x135   : > { %s513_s6 = scalar_lea.hbm %s746_s28, 128  ;;  %s517_s24 = scalar_lea.hbm %s792_s2, 256 }
 0x136   : > { %p514_p9 = scmp.ne.s32.totalorder %s746_s28, %s513_s6  ;;  %p518_p0 = scmp.lt.u32.totalorder %s746_s28, %s792_s2 }
 0x137   : > { %p519_p1 = scmp.lt.u32.totalorder %s517_s24, %s513_s6  ;;  %p521_p4 = scmp.lt.u32.totalorder %s513_s6, %s746_s28 }
 0x138   : > { %p515_p2 = pnand %p514_p9, %p685_p12 }
 0x139   : > { %p520_p11 = por %p519_p1, %p518_p0 }
 0x13a   : > { %p516_p5 = pneg %p515_p2 }
 0x13b   : > { %p522_p6 = por %p521_p4, %p520_p11 }
 0x13d   : > { %p523_p8 = pnand %p522_p6, %p516_p5 }
 0x13f   : > { %526 = shalt.err (!%p523_p8)
}
 0x140   : > { %385 = dma.vmem_to_hbm [thread:$0]  (%p685_p12), %s748_s27, 128, %s746_s28, %s255_s30  }
 0x141 PF: > { %s280_s26 = sand.u32 1, %s557_s9   ;;  %p807_p10 = scmp.ne.s32.totalorder %s797_s16, 0 }
 0x142   : > { %p808_p13 = scmp.ge.s32.totalorder %s569_s12, 2  ;;  %s281_s19 = scalar_lea.sflag [#allocation4], %s280_s26 }
 0x144   : > { %p396_p3 = pnand %p808_p13, %p807_p10 }
 0x146   : > { %552 = dma.done.wait (!%p396_p3), %s281_s19, 128  }
 0x147   : > { %554 = vsyncadd (!%p396_p3), %s281_s19, 4294967168  ;;  %p16_p7 = scmp.ge.s32.totalorder %s650_s21, 4   ;;  %s809_s9 = smov %s561_s10 }
 0x148   : > { %s810_s10 = smov %s565_s11  ;;  %s811_s11 = smov %s681_s8 }
 0x149   : > { %s812_s12 = smov %s650_s21  ;;  %18 = sbr.rel (!%p16_p7) target bundleno = 6 (0x6), region = 77 }
 0x150   :  { %286 = vsyncpa [#allocation3], 1 }
 0x151   :  { %288 = vsyncpa [#allocation3 + $0x1], 1 }
 0x152   :  { %289 = vsyncpa [#allocation6], 1 }
 0x153   :  { %290 = vsyncpa [#allocation4], 1 }
 0x154   :  { %292 = vsyncpa [#allocation4 + $0x1], 1 }

</bundles_post_ra>
